<compile_context>
chip_gen: v7x
topology: tpu7x:2x2x1
jax: 0.10.0
libtpu: 0.0.40
codegen_flags: <defaults>
</compile_context>

<pallas_src>
import jax
import jax.numpy as jnp
from jax.experimental import pallas as pl
from jax.experimental.pallas import tpu as pltpu

INPUT_SIZE = 10
HIDDEN_SIZE = 32
OUTPUT_SIZE = 4
LN_EPS = 1e-5
H = HIDDEN_SIZE
OUT_PAD = 128  # lane-dense padded output width


def weather_xlstm_kernel(
    x_ref,       # (TB, INPUT_SIZE)
    wg0_ref,     # (INPUT_SIZE, 4H)  input_proj fused into cell-0 gates
    bg0_ref,     # (1, 4H)
    wg1_ref,     # (H, 4H)           cell-1 fused gate weights
    bg1_ref,     # (1, 4H)
    aux_ref,     # (2, 3, H)         rows: exp_gate, ln_weight, ln_bias
    w_out_ref,   # (H, OUT_PAD)      zero-padded output projection
    b_out_ref,   # (1, OUT_PAD)
    o_ref,       # (TB, OUT_PAD)
):
    x = x_ref[...].astype(jnp.float32)

    def xlstm_cell(inp, wg, bg, aux):
        # single lane-dense (128-wide) gate matmul
        gates = jnp.dot(inp, wg, preferred_element_type=jnp.float32) + bg
        # one full-width sigmoid; candidate columns were pre-scaled by 2,
        # so tanh(z) = 2*sigmoid(2z) - 1 falls out of the same pass.
        s = jax.nn.sigmoid(gates)
        forget = s[:, 0 * H:1 * H]
        input_g = s[:, 1 * H:2 * H]
        candidate = 2.0 * s[:, 2 * H:3 * H] - 1.0
        output = s[:, 3 * H:4 * H]

        eg = aux[0:1, :]          # exp_gate   (1, H)
        lw = aux[1:2, :]          # LN weight  (1, H)
        lb = aux[2:3, :]          # LN bias    (1, H)

        exp_factor = jnp.exp(eg * input_g)
        cell_state = (forget * candidate) * exp_factor
        hidden = output * jnp.tanh(cell_state)

        # LayerNorm over hidden dim — single reduction pass
        mu = jnp.mean(hidden, axis=-1, keepdims=True)
        mean_sq = jnp.mean(hidden * hidden, axis=-1, keepdims=True)
        var = mean_sq - mu * mu
        hidden = (hidden - mu) * jax.lax.rsqrt(var + LN_EPS)
        return hidden * lw + lb

    h = xlstm_cell(x, wg0_ref[...], bg0_ref[...], aux_ref[0])
    h = xlstm_cell(h, wg1_ref[...], bg1_ref[...], aux_ref[1])

    # lane-dense output projection + store (extra zero lanes sliced on host)
    out = jnp.dot(h, w_out_ref[...], preferred_element_type=jnp.float32) + b_out_ref[...]
    o_ref[...] = out.astype(o_ref.dtype)


def weather_xlstm_forward(x, params, *, batch_tile=2048):
    """Run the fused forward pass. `params` is the 'kernel' dict from init_params()."""
    if x.ndim == 1:
        x = x[None, :]
    batch = x.shape[0]

    # choose batch tiling: single full block for small batches, otherwise a
    # 1-D "parallel" grid over batch (rows are independent).
    if batch <= batch_tile:
        tb = batch
        padded = batch
    else:
        tb = batch_tile
        padded = pl.cdiv(batch, tb) * tb
        if padded != batch:
            x = jnp.pad(x, ((0, padded - batch), (0, 0)))
    nb = padded // tb

    args = (
        x,
        params["wg0"], params["bg0"],
        params["wg1"], params["bg1"],
        params["aux"],
        params["w_out"], params["b_out"],
    )

    in_specs = [
        pl.BlockSpec((tb, INPUT_SIZE), lambda i: (i, 0)),          # x tile
        pl.BlockSpec((INPUT_SIZE, 4 * H), lambda i: (0, 0)),       # fused cell-0 gates (resident)
        pl.BlockSpec((1, 4 * H), lambda i: (0, 0)),
        pl.BlockSpec((H, 4 * H), lambda i: (0, 0)),                # cell-1 gates
        pl.BlockSpec((1, 4 * H), lambda i: (0, 0)),
        pl.BlockSpec((2, 3, H), lambda i: (0, 0, 0)),              # eg / lw / lb
        pl.BlockSpec((H, OUT_PAD), lambda i: (0, 0)),              # padded w_out
        pl.BlockSpec((1, OUT_PAD), lambda i: (0, 0)),              # padded b_out
    ]
    out_spec = pl.BlockSpec((tb, OUT_PAD), lambda i: (i, 0))

    out = pl.pallas_call(
        weather_xlstm_kernel,
        out_shape=jax.ShapeDtypeStruct((padded, OUT_PAD), jnp.float32),
        grid=(nb,),
        in_specs=in_specs,
        out_specs=out_spec,
        compiler_params=pltpu.CompilerParams(
            dimension_semantics=("parallel",),
            vmem_limit_bytes=32 * 1024 * 1024),
    )(*args)

    return out[:batch, :OUTPUT_SIZE]


# ---------------------------------------------------------------------------
# Deterministic parameter initialization (mirrors _init_weather_weights):
#   Linear weights: xavier normal, bias = 0.01
#   exp_gate = 0.1, LayerNorm weight = 1, bias = 0
# Returns both the kernel-packed params (fused / scaled / padded) and the raw
# per-layer params used by the pure-JAX reference.
# ---------------------------------------------------------------------------
def _xavier_normal(key, fan_in, fan_out):
    std = (2.0 / (fan_in + fan_out)) ** 0.5
    # generated in PyTorch (out, in) layout, then transposed to (in, out)
    w = jax.random.normal(key, (fan_out, fan_in), dtype=jnp.float32) * std
    return w.T


def init_params(key):
    keys = jax.random.split(key, 16)
    kit = iter(keys)

    def linear(fan_in, fan_out):
        w = _xavier_normal(next(kit), fan_in, fan_out)            # (in, out)
        b = jnp.full((1, fan_out), 0.01, dtype=jnp.float32)       # (1, out)
        return w, b

    def cell_raw():
        wf, bf = linear(H, H)
        wi, bi = linear(H, H)
        wc, bc = linear(H, H)
        wo, bo = linear(H, H)
        eg = jnp.full((1, H), 0.1, dtype=jnp.float32)
        lw = jnp.ones((1, H), dtype=jnp.float32)
        lb = jnp.zeros((1, H), dtype=jnp.float32)
        return dict(wf=wf, bf=bf, wi=wi, bi=bi, wc=wc, bc=bc,
                    wo=wo, bo=bo, eg=eg, lw=lw, lb=lb)

    def fuse_cell(c):
        # [forget | input | candidate*2 | output]; candidate pre-scaled by 2
        # so the kernel can recover tanh via 2*sigmoid(2z) - 1.
        wg = jnp.concatenate([c["wf"], c["wi"], 2.0 * c["wc"], c["wo"]], axis=1)   # (H, 4H)
        bg = jnp.concatenate([c["bf"], c["bi"], 2.0 * c["bc"], c["bo"]], axis=1)   # (1, 4H)
        aux = jnp.concatenate([c["eg"], c["lw"], c["lb"]], axis=0)                  # (3, H)
        return wg, bg, aux

    w_in, b_in = linear(INPUT_SIZE, H)
    cell1 = cell_raw()
    cell2 = cell_raw()
    w_out, b_out = linear(H, OUTPUT_SIZE)

    wg1, bg1, aux1 = fuse_cell(cell1)
    wg2, bg2, aux2 = fuse_cell(cell2)

    # fuse input_proj into cell-0's gate matmul (two consecutive linears)
    wg0_fused = w_in @ wg1                     # (INPUT_SIZE, 4H)
    bg0_fused = b_in @ wg1 + bg1               # (1, 4H)

    # lane-dense padded output projection
    w_out_pad = jnp.zeros((H, OUT_PAD), jnp.float32).at[:, :OUTPUT_SIZE].set(w_out)
    b_out_pad = jnp.zeros((1, OUT_PAD), jnp.float32).at[:, :OUTPUT_SIZE].set(b_out)

    kernel_params = {
        "wg0": wg0_fused, "bg0": bg0_fused,
        "wg1": wg2, "bg1": bg2,
        "aux": jnp.stack([aux1, aux2], axis=0),   # (2, 3, H)
        "w_out": w_out_pad, "b_out": b_out_pad,
    }
    raw_params = {
        "w_in": w_in, "b_in": b_in,
        "cell1": cell1, "cell2": cell2,
        "w_out": w_out, "b_out": b_out,
    }
    return kernel_params, raw_params


# Pure-JAX reference in the original (unfused) formulation, for correctness.
def _ref_forward(x, raw):
    if x.ndim == 1:
        x = x[None, :]

    def cell(h, p):
        f = jax.nn.sigmoid(h @ p["wf"] + p["bf"])
        ig = jax.nn.sigmoid(h @ p["wi"] + p["bi"])
        c = jnp.tanh(h @ p["wc"] + p["bc"])
        o = jax.nn.sigmoid(h @ p["wo"] + p["bo"])
        cs = f * c * jnp.exp(p["eg"] * ig)
        hid = o * jnp.tanh(cs)
        mu = jnp.mean(hid, axis=-1, keepdims=True)
        var = jnp.mean((hid - mu) ** 2, axis=-1, keepdims=True)
        hid = (hid - mu) / jnp.sqrt(var + LN_EPS)
        return hid * p["lw"] + p["lb"]

    h = x @ raw["w_in"] + raw["b_in"]
    h = cell(h, raw["cell1"])
    h = cell(h, raw["cell2"])
    return h @ raw["w_out"] + raw["b_out"]


if __name__ == "__main__":
    key = jax.random.PRNGKey(0)
    pkey, xkey, xkey2 = jax.random.split(key, 3)

    kernel_params, raw_params = init_params(pkey)

    # small batch (single grid step, full-array block)
    batch = 2
    x = jax.random.normal(xkey, (batch, INPUT_SIZE), dtype=jnp.float32)
    out = jax.block_until_ready(weather_xlstm_forward(x, kernel_params))
    ref = _ref_forward(x, raw_params)
    assert out.shape == (batch, OUTPUT_SIZE)
    assert jnp.allclose(out, ref, atol=1e-4, rtol=1e-4), "mismatch vs reference (batch=2)"

    # larger, non-divisible batch exercises the batch grid + padding path
    batch2 = 272
    x2 = jax.random.normal(xkey2, (batch2, INPUT_SIZE), dtype=jnp.float32)
    out2 = jax.block_until_ready(
        weather_xlstm_forward(x2, kernel_params, batch_tile=128))
    ref2 = _ref_forward(x2, raw_params)
    assert out2.shape == (batch2, OUTPUT_SIZE)
    assert jnp.allclose(out2, ref2, atol=1e-4, rtol=1e-4), "mismatch vs reference (batch=272)"

    print("KERNEL_OK")
</pallas_src>

<mosaic_0001>
module attributes {stable_mosaic.version = 11 : i64} {
  func.func @weather_xlstm_kernel(%arg0: i32, %arg1: memref<2x10xf32, #tpu.memory_space<vmem>>, %arg2: memref<10x128xf32, #tpu.memory_space<vmem>>, %arg3: memref<1x128xf32, #tpu.memory_space<vmem>>, %arg4: memref<32x128xf32, #tpu.memory_space<vmem>>, %arg5: memref<1x128xf32, #tpu.memory_space<vmem>>, %arg6: memref<2x3x32xf32, #tpu.memory_space<vmem>>, %arg7: memref<32x128xf32, #tpu.memory_space<vmem>>, %arg8: memref<1x128xf32, #tpu.memory_space<vmem>>, %arg9: memref<2x128xf32, #tpu.memory_space<vmem>>) attributes {dimension_semantics = [#tpu.dimension_semantics<parallel>], iteration_bounds = array<i64: 1>, scalar_prefetch = 0 : i64, scratch_operands = 0 : i64, tpu.core_type = #tpu.core_type<tc>, window_params = [{transform_indices = @transform_0, window_bounds = array<i64: 2, 10>}, {pipeline_mode = #tpu.pipeline_mode<synchronous>, transform_indices = @transform_1, window_bounds = array<i64: 10, 128>}, {pipeline_mode = #tpu.pipeline_mode<synchronous>, transform_indices = @transform_2, window_bounds = array<i64: 1, 128>}, {pipeline_mode = #tpu.pipeline_mode<synchronous>, transform_indices = @transform_3, window_bounds = array<i64: 32, 128>}, {pipeline_mode = #tpu.pipeline_mode<synchronous>, transform_indices = @transform_4, window_bounds = array<i64: 1, 128>}, {pipeline_mode = #tpu.pipeline_mode<synchronous>, transform_indices = @transform_5, window_bounds = array<i64: 2, 3, 32>}, {pipeline_mode = #tpu.pipeline_mode<synchronous>, transform_indices = @transform_6, window_bounds = array<i64: 32, 128>}, {pipeline_mode = #tpu.pipeline_mode<synchronous>, transform_indices = @transform_7, window_bounds = array<i64: 1, 128>}, {transform_indices = @transform_8, window_bounds = array<i64: 2, 128>}]} {
    %c0 = arith.constant 0 : index
    %c0_0 = arith.constant 0 : index
    %0 = vector.load %arg1[%c0, %c0_0] : memref<2x10xf32, #tpu.memory_space<vmem>>, vector<2x10xf32>
    %c0_1 = arith.constant 0 : index
    %c0_2 = arith.constant 0 : index
    %1 = vector.load %arg2[%c0_1, %c0_2] : memref<10x128xf32, #tpu.memory_space<vmem>>, vector<10x128xf32>
    %c0_3 = arith.constant 0 : index
    %c0_4 = arith.constant 0 : index
    %2 = vector.load %arg3[%c0_3, %c0_4] : memref<1x128xf32, #tpu.memory_space<vmem>>, vector<1x128xf32>
    %c0_5 = arith.constant 0 : index
    %c0_6 = arith.constant 0 : index
    %c0_7 = arith.constant 0 : index
    %3 = vector.load %arg6[%c0_5, %c0_6, %c0_7] : memref<2x3x32xf32, #tpu.memory_space<vmem>>, vector<1x3x32xf32>
    %4 = vector.shape_cast %3 : vector<1x3x32xf32> to vector<3x32xf32>
    %cst = arith.constant dense<0.000000e+00> : vector<2x128xf32>
    %5 = tpu.matmul %0, %1, %cst {dimension_numbers = #tpu.dot_dimension_numbers<[1], [0], [0], [1], [0, 0, 1, 1], [], []>} : vector<2x10xf32>, vector<10x128xf32>, vector<2x128xf32> -> vector<2x128xf32>
    %6 = vector.broadcast %2 : vector<1x128xf32> to vector<2x128xf32>
    %7 = arith.addf %5, %6 : vector<2x128xf32>
    %8 = arith.negf %7 : vector<2x128xf32>
    %9 = math.exp %8 : vector<2x128xf32>
    %cst_8 = arith.constant 1.000000e+00 : f32
    %10 = vector.broadcast %cst_8 : f32 to vector<2x128xf32>
    %11 = arith.addf %10, %9 : vector<2x128xf32>
    %12 = arith.divf %10, %11 : vector<2x128xf32>
    %13 = vector.extract_strided_slice %12 {offsets = [0, 0], sizes = [2, 32], strides = [1, 1]} : vector<2x128xf32> to vector<2x32xf32>
    %14 = vector.extract_strided_slice %12 {offsets = [0, 32], sizes = [2, 32], strides = [1, 1]} : vector<2x128xf32> to vector<2x32xf32>
    %15 = vector.extract_strided_slice %12 {offsets = [0, 64], sizes = [2, 32], strides = [1, 1]} : vector<2x128xf32> to vector<2x32xf32>
    %cst_9 = arith.constant 2.000000e+00 : f32
    %16 = vector.broadcast %cst_9 : f32 to vector<2x32xf32>
    %17 = arith.mulf %16, %15 : vector<2x32xf32>
    %cst_10 = arith.constant 1.000000e+00 : f32
    %18 = vector.broadcast %cst_10 : f32 to vector<2x32xf32>
    %19 = arith.subf %17, %18 : vector<2x32xf32>
    %20 = vector.extract_strided_slice %12 {offsets = [0, 96], sizes = [2, 32], strides = [1, 1]} : vector<2x128xf32> to vector<2x32xf32>
    %21 = vector.extract_strided_slice %4 {offsets = [0, 0], sizes = [1, 32], strides = [1, 1]} : vector<3x32xf32> to vector<1x32xf32>
    %22 = vector.extract_strided_slice %4 {offsets = [1, 0], sizes = [1, 32], strides = [1, 1]} : vector<3x32xf32> to vector<1x32xf32>
    %23 = vector.extract_strided_slice %4 {offsets = [2, 0], sizes = [1, 32], strides = [1, 1]} : vector<3x32xf32> to vector<1x32xf32>
    %24 = vector.broadcast %21 : vector<1x32xf32> to vector<2x32xf32>
    %25 = arith.mulf %24, %14 : vector<2x32xf32>
    %26 = math.exp %25 : vector<2x32xf32>
    %27 = arith.mulf %13, %19 : vector<2x32xf32>
    %28 = arith.mulf %27, %26 : vector<2x32xf32>
    %29 = math.tanh %28 : vector<2x32xf32>
    %30 = arith.mulf %20, %29 : vector<2x32xf32>
    %cst_11 = arith.constant dense<0.000000e+00> : vector<2xf32>
    %31 = vector.multi_reduction <add>, %30, %cst_11 [1] : vector<2x32xf32> to vector<2xf32>
    %32 = vector.shape_cast %31 : vector<2xf32> to vector<2x1xf32>
    %cst_12 = arith.constant 3.200000e+01 : f32
    %33 = vector.broadcast %cst_12 : f32 to vector<2x1xf32>
    %34 = arith.divf %32, %33 : vector<2x1xf32>
    %35 = arith.mulf %30, %30 : vector<2x32xf32>
    %cst_13 = arith.constant dense<0.000000e+00> : vector<2xf32>
    %36 = vector.multi_reduction <add>, %35, %cst_13 [1] : vector<2x32xf32> to vector<2xf32>
    %37 = vector.shape_cast %36 : vector<2xf32> to vector<2x1xf32>
    %cst_14 = arith.constant 3.200000e+01 : f32
    %38 = vector.broadcast %cst_14 : f32 to vector<2x1xf32>
    %39 = arith.divf %37, %38 : vector<2x1xf32>
    %40 = arith.mulf %34, %34 : vector<2x1xf32>
    %41 = arith.subf %39, %40 : vector<2x1xf32>
    %42 = vector.broadcast %34 : vector<2x1xf32> to vector<2x32xf32>
    %43 = arith.subf %30, %42 : vector<2x32xf32>
    %cst_15 = arith.constant 9.99999974E-6 : f32
    %44 = vector.broadcast %cst_15 : f32 to vector<2x1xf32>
    %45 = arith.addf %41, %44 : vector<2x1xf32>
    %46 = math.rsqrt %45 : vector<2x1xf32>
    %47 = vector.broadcast %46 : vector<2x1xf32> to vector<2x32xf32>
    %48 = arith.mulf %43, %47 : vector<2x32xf32>
    %49 = vector.broadcast %22 : vector<1x32xf32> to vector<2x32xf32>
    %50 = arith.mulf %48, %49 : vector<2x32xf32>
    %51 = vector.broadcast %23 : vector<1x32xf32> to vector<2x32xf32>
    %52 = arith.addf %50, %51 : vector<2x32xf32>
    %c0_16 = arith.constant 0 : index
    %c0_17 = arith.constant 0 : index
    %53 = vector.load %arg4[%c0_16, %c0_17] : memref<32x128xf32, #tpu.memory_space<vmem>>, vector<32x128xf32>
    %c0_18 = arith.constant 0 : index
    %c0_19 = arith.constant 0 : index
    %54 = vector.load %arg5[%c0_18, %c0_19] : memref<1x128xf32, #tpu.memory_space<vmem>>, vector<1x128xf32>
    %c1 = arith.constant 1 : index
    %c0_20 = arith.constant 0 : index
    %c0_21 = arith.constant 0 : index
    %55 = vector.load %arg6[%c1, %c0_20, %c0_21] : memref<2x3x32xf32, #tpu.memory_space<vmem>>, vector<1x3x32xf32>
    %56 = vector.shape_cast %55 : vector<1x3x32xf32> to vector<3x32xf32>
    %cst_22 = arith.constant dense<0.000000e+00> : vector<2x128xf32>
    %57 = tpu.matmul %52, %53, %cst_22 {dimension_numbers = #tpu.dot_dimension_numbers<[1], [0], [0], [1], [0, 0, 1, 1], [], []>} : vector<2x32xf32>, vector<32x128xf32>, vector<2x128xf32> -> vector<2x128xf32>
    %58 = vector.broadcast %54 : vector<1x128xf32> to vector<2x128xf32>
    %59 = arith.addf %57, %58 : vector<2x128xf32>
    %60 = arith.negf %59 : vector<2x128xf32>
    %61 = math.exp %60 : vector<2x128xf32>
    %cst_23 = arith.constant 1.000000e+00 : f32
    %62 = vector.broadcast %cst_23 : f32 to vector<2x128xf32>
    %63 = arith.addf %62, %61 : vector<2x128xf32>
    %64 = arith.divf %62, %63 : vector<2x128xf32>
    %65 = vector.extract_strided_slice %64 {offsets = [0, 0], sizes = [2, 32], strides = [1, 1]} : vector<2x128xf32> to vector<2x32xf32>
    %66 = vector.extract_strided_slice %64 {offsets = [0, 32], sizes = [2, 32], strides = [1, 1]} : vector<2x128xf32> to vector<2x32xf32>
    %67 = vector.extract_strided_slice %64 {offsets = [0, 64], sizes = [2, 32], strides = [1, 1]} : vector<2x128xf32> to vector<2x32xf32>
    %cst_24 = arith.constant 2.000000e+00 : f32
    %68 = vector.broadcast %cst_24 : f32 to vector<2x32xf32>
    %69 = arith.mulf %68, %67 : vector<2x32xf32>
    %cst_25 = arith.constant 1.000000e+00 : f32
    %70 = vector.broadcast %cst_25 : f32 to vector<2x32xf32>
    %71 = arith.subf %69, %70 : vector<2x32xf32>
    %72 = vector.extract_strided_slice %64 {offsets = [0, 96], sizes = [2, 32], strides = [1, 1]} : vector<2x128xf32> to vector<2x32xf32>
    %73 = vector.extract_strided_slice %56 {offsets = [0, 0], sizes = [1, 32], strides = [1, 1]} : vector<3x32xf32> to vector<1x32xf32>
    %74 = vector.extract_strided_slice %56 {offsets = [1, 0], sizes = [1, 32], strides = [1, 1]} : vector<3x32xf32> to vector<1x32xf32>
    %75 = vector.extract_strided_slice %56 {offsets = [2, 0], sizes = [1, 32], strides = [1, 1]} : vector<3x32xf32> to vector<1x32xf32>
    %76 = vector.broadcast %73 : vector<1x32xf32> to vector<2x32xf32>
    %77 = arith.mulf %76, %66 : vector<2x32xf32>
    %78 = math.exp %77 : vector<2x32xf32>
    %79 = arith.mulf %65, %71 : vector<2x32xf32>
    %80 = arith.mulf %79, %78 : vector<2x32xf32>
    %81 = math.tanh %80 : vector<2x32xf32>
    %82 = arith.mulf %72, %81 : vector<2x32xf32>
    %cst_26 = arith.constant dense<0.000000e+00> : vector<2xf32>
    %83 = vector.multi_reduction <add>, %82, %cst_26 [1] : vector<2x32xf32> to vector<2xf32>
    %84 = vector.shape_cast %83 : vector<2xf32> to vector<2x1xf32>
    %cst_27 = arith.constant 3.200000e+01 : f32
    %85 = vector.broadcast %cst_27 : f32 to vector<2x1xf32>
    %86 = arith.divf %84, %85 : vector<2x1xf32>
    %87 = arith.mulf %82, %82 : vector<2x32xf32>
    %cst_28 = arith.constant dense<0.000000e+00> : vector<2xf32>
    %88 = vector.multi_reduction <add>, %87, %cst_28 [1] : vector<2x32xf32> to vector<2xf32>
    %89 = vector.shape_cast %88 : vector<2xf32> to vector<2x1xf32>
    %cst_29 = arith.constant 3.200000e+01 : f32
    %90 = vector.broadcast %cst_29 : f32 to vector<2x1xf32>
    %91 = arith.divf %89, %90 : vector<2x1xf32>
    %92 = arith.mulf %86, %86 : vector<2x1xf32>
    %93 = arith.subf %91, %92 : vector<2x1xf32>
    %94 = vector.broadcast %86 : vector<2x1xf32> to vector<2x32xf32>
    %95 = arith.subf %82, %94 : vector<2x32xf32>
    %cst_30 = arith.constant 9.99999974E-6 : f32
    %96 = vector.broadcast %cst_30 : f32 to vector<2x1xf32>
    %97 = arith.addf %93, %96 : vector<2x1xf32>
    %98 = math.rsqrt %97 : vector<2x1xf32>
    %99 = vector.broadcast %98 : vector<2x1xf32> to vector<2x32xf32>
    %100 = arith.mulf %95, %99 : vector<2x32xf32>
    %101 = vector.broadcast %74 : vector<1x32xf32> to vector<2x32xf32>
    %102 = arith.mulf %100, %101 : vector<2x32xf32>
    %103 = vector.broadcast %75 : vector<1x32xf32> to vector<2x32xf32>
    %104 = arith.addf %102, %103 : vector<2x32xf32>
    %c0_31 = arith.constant 0 : index
    %c0_32 = arith.constant 0 : index
    %105 = vector.load %arg7[%c0_31, %c0_32] : memref<32x128xf32, #tpu.memory_space<vmem>>, vector<32x128xf32>
    %cst_33 = arith.constant dense<0.000000e+00> : vector<2x128xf32>
    %106 = tpu.matmul %104, %105, %cst_33 {dimension_numbers = #tpu.dot_dimension_numbers<[1], [0], [0], [1], [0, 0, 1, 1], [], []>} : vector<2x32xf32>, vector<32x128xf32>, vector<2x128xf32> -> vector<2x128xf32>
    %c0_34 = arith.constant 0 : index
    %c0_35 = arith.constant 0 : index
    %107 = vector.load %arg8[%c0_34, %c0_35] : memref<1x128xf32, #tpu.memory_space<vmem>>, vector<1x128xf32>
    %108 = vector.broadcast %107 : vector<1x128xf32> to vector<2x128xf32>
    %109 = arith.addf %106, %108 : vector<2x128xf32>
    %c0_36 = arith.constant 0 : index
    %c0_37 = arith.constant 0 : index
    %110 = vector.load %arg9[%c0_36, %c0_37] : memref<2x128xf32, #tpu.memory_space<vmem>>, vector<2x128xf32>
    tpu.vector_store %arg9[%c0_36, %c0_37], %109 {strides = array<i32>} : memref<2x128xf32, #tpu.memory_space<vmem>>, vector<2x128xf32>,
    return
  }
  func.func @transform_0(%arg0: i32) -> (i32, i32) {
    %c0_i32 = arith.constant 0 : i32
    %c0_i32_0 = arith.constant 0 : i32
    return %arg0, %c0_i32 : i32, i32
  }
  func.func @transform_1(%arg0: i32) -> (i32, i32) {
    %c0_i32 = arith.constant 0 : i32
    %c0_i32_0 = arith.constant 0 : i32
    %c0_i32_1 = arith.constant 0 : i32
    return %c0_i32, %c0_i32_0 : i32, i32
  }
  func.func @transform_2(%arg0: i32) -> (i32, i32) {
    %c0_i32 = arith.constant 0 : i32
    %c0_i32_0 = arith.constant 0 : i32
    %c0_i32_1 = arith.constant 0 : i32
    return %c0_i32, %c0_i32_0 : i32, i32
  }
  func.func @transform_3(%arg0: i32) -> (i32, i32) {
    %c0_i32 = arith.constant 0 : i32
    %c0_i32_0 = arith.constant 0 : i32
    %c0_i32_1 = arith.constant 0 : i32
    return %c0_i32, %c0_i32_0 : i32, i32
  }
  func.func @transform_4(%arg0: i32) -> (i32, i32) {
    %c0_i32 = arith.constant 0 : i32
    %c0_i32_0 = arith.constant 0 : i32
    %c0_i32_1 = arith.constant 0 : i32
    return %c0_i32, %c0_i32_0 : i32, i32
  }
  func.func @transform_5(%arg0: i32) -> (i32, i32, i32) {
    %c0_i32 = arith.constant 0 : i32
    %c0_i32_0 = arith.constant 0 : i32
    %c0_i32_1 = arith.constant 0 : i32
    %c0_i32_2 = arith.constant 0 : i32
    return %c0_i32, %c0_i32_0, %c0_i32_1 : i32, i32, i32
  }
  func.func @transform_6(%arg0: i32) -> (i32, i32) {
    %c0_i32 = arith.constant 0 : i32
    %c0_i32_0 = arith.constant 0 : i32
    %c0_i32_1 = arith.constant 0 : i32
    return %c0_i32, %c0_i32_0 : i32, i32
  }
  func.func @transform_7(%arg0: i32) -> (i32, i32) {
    %c0_i32 = arith.constant 0 : i32
    %c0_i32_0 = arith.constant 0 : i32
    %c0_i32_1 = arith.constant 0 : i32
    return %c0_i32, %c0_i32_0 : i32, i32
  }
  func.func @transform_8(%arg0: i32) -> (i32, i32) {
    %c0_i32 = arith.constant 0 : i32
    %c0_i32_0 = arith.constant 0 : i32
    return %arg0, %c0_i32 : i32, i32
  }
}

</mosaic_0001>

<bundles_post_ra>
// kernel: tpu_custom_call.1
= control target key start
LH: loop header
LB: loop body
LE: loop exit
PB: predicated region body
PF: predicated region fallthrough
CT: control target
= control target key end

     0   :  { %13 = vsyncpa [#allocation3], 0  ;;  %s826_s0 = inlined_call_operand.vmem [shape: f32[2,10], index: 0, kind: input, shape index: {}]   ;;  %s827_s1 = inlined_call_operand.hbm [shape: f32[10,128], index: 1, kind: input, shape index: {}]   ;;  %s828_s2 = inlined_call_operand.vmem [shape: f32[1,128], index: 2, kind: input, shape index: {}]   ;;  %s829_s3 = inlined_call_operand.hbm [shape: f32[32,128], index: 3, kind: input, shape index: {}]   ;;  %s830_s4 = inlined_call_operand.vmem [shape: f32[1,128], index: 4, kind: input, shape index: {}]   ;;  %s831_s5 = inlined_call_operand.vmem [shape: f32[2,3,32], index: 5, kind: input, shape index: {}]   ;;  %s832_s6 = inlined_call_operand.vmem [shape: f32[32,128], index: 6, kind: input, shape index: {}]   ;;  %s833_s7 = inlined_call_operand.vmem [shape: f32[1,128], index: 7, kind: input, shape index: {}]   ;;  %s834_s8 = inlined_call_operand.hbm [shape: f32[2,128], index: 8, kind: output, shape index: {}]  }
   0x1   :  { %14 = vsyncpa [#allocation6], 0 }
   0x2   :  { %15 = vsyncpa [#allocation4], 0  ;;  %s659_s27 = smov [#allocation2]   ;;  %s587_s9 = scalar_lea.hbm %s827_s1, 256 }
   0x3   :  { %s23_s28 = sshll.u32 %s659_s27, 4  ;;  %p588_p0 = scmp.ne.s32.totalorder %s827_s1, %s587_s9  ;;  %s24_s28 = int_to_ptr.vmem [resolvable:$true] %s23_s28 }
   0x4   :  { %p591_p1 = scmp.lt.u32.totalorder %s587_s9, %s827_s1 }
   0x6   :  { %p593_p2 = pnand %p591_p1, %p588_p0 }
   0x8   :  { %596 = shalt.err (!%p593_p2)
}
   0x9   :  { %s597_s14 = scalar_lea.vmem %s24_s28, 256  ;;  %p602_p4 = scmp.lt.s32.totalorder %s24_s28, %s24_s28 }
   0xa   :  { %p598_p3 = scmp.ne.s32.totalorder %s24_s28, %s597_s14  ;;  %p603_p5 = scmp.lt.s32.totalorder %s597_s14, %s597_s14 }
   0xc   :  { %p604_p6 = por %p603_p5, %p602_p4 }
   0xe   :  { %p605_p7 = pnand %p604_p6, %p598_p3 }
  0x10   :  { %608 = shalt.err (!%p605_p7)
}
  0x11   :  { %s660_s15 = smov 128   ;;  %s661_s16 = smov 8  }
  0x12   :  { %29 = dma.hbm_to_vmem [thread:$0]  %s827_s1, 256, %s24_s28, [#allocation3], %s660_s15, %s660_s15, %s661_s16  }
  0x13   :  { %s662_s19 = smov [#allocation5]   ;;  %s609_s23 = scalar_lea.hbm %s829_s3, 512 }
  0x14   :  { %s37_s20 = sshll.u32 %s662_s19, 4  ;;  %p610_p8 = scmp.ne.s32.totalorder %s829_s3, %s609_s23  ;;  %s38_s20 = int_to_ptr.vmem [resolvable:$true] %s37_s20 }
  0x15   :  { %p613_p9 = scmp.lt.u32.totalorder %s609_s23, %s829_s3 }
  0x17   :  { %p615_p10 = pnand %p613_p9, %p610_p8 }
  0x19   :  { %618 = shalt.err (!%p615_p10)
}
  0x1a   :  { %s619_s29 = scalar_lea.vmem %s38_s20, 512  ;;  %p624_p12 = scmp.lt.s32.totalorder %s38_s20, %s38_s20 }
  0x1b   :  { %p620_p11 = scmp.ne.s32.totalorder %s38_s20, %s619_s29  ;;  %p625_p13 = scmp.lt.s32.totalorder %s619_s29, %s619_s29 }
  0x1d   :  { %p626_p0 = por %p625_p13, %p624_p12 }
  0x1f   :  { %p627_p1 = pnand %p626_p0, %p620_p11 }
  0x21   :  { %630 = shalt.err (!%p627_p1)
}
  0x22   :  { %43 = dma.hbm_to_vmem [thread:$0]  %s829_s3, 512, %s38_s20, [#allocation6], %s660_s15, %s660_s15, %s661_s16  }
  0x23   :  { %653 = dma.done.wait [#allocation3], 256  }
  0x24   :  { %654 = vsyncadd [#allocation3], 4294967040 }
  0x25   :  { %655 = dma.done.wait [#allocation6], 512  }
  0x26   :  { %656 = vsyncadd [#allocation6], 4294966784  ;;  %v663_v0 = vmov 0.0|0.0   ;;  %vm664_vm0 = vmmov 0   ;;  %v665_v1 = vmov 0.0   ;;  %vm73_vm1 = vcmask 1041408  }
  0x27   :  { %539 = vmatprep.subr.bf16.mxu0 %v663_v0  ;;  %543 = vmatprep.subr.bf16.mxu1 %v663_v0  ;;  %v59_v2 = vld [vmem:[#allocation2] sm:$0xff]  ;;  %v60_v3 = vld [vmem:[#allocation2 + $0x8] sm:$0x3]  ;;  %vm666_vm2 = vmmov 1   ;;  %vm69_vm4 = vcmask 80896   ;;  %s667_s11 = smov 96   ;;  %v155_v16 = vlaneseq }
  0x28   :  { %514 = vmatprep.mubr.msk.f32.mxu0 %vm664_vm0, %v665_v1  ;;  %525 = vmatprep.mubr.msk.f32.mxu1 %vm664_vm0, %v665_v1  ;;  %vm541_vm3 = vmpackc.low %vm73_vm1, %vm666_vm2  ;;  %v540_v4 = vpack.c.bf16 %v60_v3, %v59_v2  ;;  %v58_v5 = vld [vmem:[%s826_s0] sm:$0x3]  ;;  %s668_s0 = smov 64   ;;  %s669_s13 = smov 32   ;;  %vm182_vm5 = vcmask 254976   ;;  %v221_v40 = vld [vmem:[#allocation5] sm:$0xff] }
  0x29   :  { %v485_v6 = vld [vmem:[%s828_s2] ss:$0 sm:$0xff]  ;;  %v751_v17 = vshrl.u32 %v155_v16, 7  ;;  %v222_v41 = vld [vmem:[#allocation5 + $0x8] sm:$0xff]  ;;  %v224_v44 = vld [vmem:[#allocation5 + $0x18] sm:$0xff]  ;;  %vm237_vm6 = vcmask 261120  }
  0x2a   :  { %542 = vmatpush3.bf16.msk.msra.mxu0 %vm541_vm3, %v540_v4  ;;  %v62_v19 = vld [vmem:[%s831_s5] sm:$0x7]  ;;  %v544_v43 = vpack.c.bf16 %v222_v41, %v221_v40  ;;  %s670_s25 = smov [#allocation7]  }
  0x2b   :  { %549 = vmatprep.subr.bf16.mxu0 %v663_v0  ;;  %v157_v18 = vsub.s32 0, %v751_v17  ;;  %v214_v36 = vsub.s32 2, %v751_v17  ;;  %v205_v38 = vsub.s32 1, %v751_v17  ;;  %v223_v42 = vld [vmem:[#allocation5 + $0x10] sm:$0xff]  ;;  %v385_v17 = vld [vmem:[%s832_s6 + $0x18] sm:$0xff]  ;;  %s475_s26 = sshll.u32 %s670_s25, 4  ;;  %s476_s26 = int_to_ptr.vmem [resolvable:$true] %s475_s26 }
  0x2c   :  { %545 = vmatpush3.bf16.msra.mxu1 %v544_v43  ;;  %v547_v45 = vpack.c.bf16 %v224_v44, %v223_v42  ;;  %v491_v61 = vld [vmem:[%s830_s4] ss:$0 sm:$0xff]  ;;  %s631_s27 = scalar_lea.vmem %s476_s26, 32  ;;  %p636_p3 = scmp.lt.s32.totalorder %s476_s26, %s476_s26 }
  0x2d   :  { %515 = vmatmul.mubr.msk.f32.vlgmr.msra.gmra.mrb[0].mxu0 %vm69_vm4, %v58_v5  ;;  %v158_v20 = vrot.slane %v62_v19, %v157_v18  ;;  %v215_v37 = vrot.slane %v62_v19, %v214_v36  ;;  %v206_v39 = vrot.slane %v62_v19, %v205_v38  ;;  %546 = vmatprep.subr.bf16.mxu1 %v663_v0  ;;  %p632_p2 = scmp.ne.s32.totalorder %s476_s26, %s631_s27  ;;  %p637_p4 = scmp.lt.s32.totalorder %s631_s27, %s631_s27 }
  0x2e   :  { %536 = vmatprep.mubr.msk.f32.mxu0 %vm664_vm0, %v665_v1 }
  0x2f   :  { %p638_p5 = por %p637_p4, %p636_p3 }
  0x30   :  { %548 = vmatpush3.bf16.msra.mxu1 %v547_v45 }
  0x31   :  { %p639_p6 = pnand %p638_p5, %p632_p2 }
 0x100   :  { %v143_v7 = vpop.f32.mrb[0].mxu0 }
 0x101   :  { %v144_v8 = vadd.f32 %v485_v6, %v143_v7  ;;  %v516_v9 = vpop.f32.mrb[1].mxu0 }
 0x103   :  { %v488_v10 = vmul.f32 -1.442695, %v144_v8  ;;  %v490_v8 = vld [vmem:[%s831_s5 + $0x4] sm:$0x7] }
 0x104   :  { %v321_v9 = vrot.slane %v490_v8, %v157_v18 }
 0x105   :  { %567 = vpow2.f32 %v488_v10 }
 0x10f   :  { %v568_v11 = vpop.eup %567 }
 0x110   :  { %v150_v12 = vadd.f32 1.0, %v568_v11 }
 0x112   :  { %569 = vrcp.f32 %v150_v12 }
 0x11c   :  { %v570_v13 = vpop.eup %569 }
 0x11d   :  { %160 = vrot.lane.b32.xlu0 %v570_v13, %s667_s11  ;;  %v153_v14 = vmul.f32 2.0, %v570_v13 }
 0x11f   :  { %v489_v15 = vadd.f32 -1.0, %v153_v14 }
 0x121   :  { %167 = vrot.lane.b32.xlu0 %v489_v15, %s668_s0 }
 0x18f   :  { %v161_v21 = vpop.permute.xlu0 %160 }
 0x190   :  { %v163_v22 = vmul.f32 %v161_v21, %v158_v20 }
 0x192   :  { %v164_v23 = vmul.f32 1.442695, %v163_v22 }
 0x193   :  { %v168_v24 = vpop.permute.xlu0 %167 }
 0x194   :  { %571 = vpow2.f32 %v164_v23  ;;  %v170_v25 = vmul.f32 %v570_v13, %v168_v24 }
 0x19e   :  { %v572_v26 = vpop.eup %571 }
 0x19f   :  { %v171_v27 = vmul.f32 %v572_v26, %v170_v25  ;;  %v376_v26 = vrot.slane %v490_v8, %v214_v36 }
 0x1a1   :  { %573 = vtanh.f32 %v171_v27  ;;  %v367_v27 = vrot.slane %v490_v8, %v205_v38 }
 0x1ab   :  { %v574_v28 = vpop.eup %573 }
 0x1ac   :  { %174 = vrot.lane.b32.xlu1 %v574_v28, %s667_s11  ;;  %v382_v28 = vld [vmem:[%s832_s6] sm:$0xff] }
 0x21e   :  { %v175_v29 = vpop.permute.xlu1 %174 }
 0x21f   :  { %v177_v30 = vmul.f32 %v570_v13, %v175_v29  ;;  %v383_v29 = vld [vmem:[%s832_s6 + $0x8] sm:$0xff] }
 0x221   :  { %179 = vrot.lane.b32.xlu1 %v177_v30, %s669_s13  ;;  %v188_v31 = vmul.f32 %v177_v30, %v177_v30 }
 0x223   :  { %190 = vrot.lane.b32.xlu0 %v188_v31, %s669_s13  ;;  %v550_v31 = vpack.c.bf16 %v383_v29, %v382_v28 }
 0x225   :  { %551 = vmatpush3.bf16.msra.mxu0 %v550_v31 }
 0x226   :  { %552 = vmatprep.subr.bf16.mxu0 %v663_v0  ;;  %v495_v0 = vld [vmem:[%s833_s7] ss:$0 sm:$0xff] }
 0x293   :  { %v180_v32 = vpop.permute.xlu1 %179 }
 0x294   :  { %v183_v33 = vsel %vm182_vm5, %v180_v32, 0.0 }
 0x295   :  { %184 = vadd.xlane.f32.xlu1 %v183_v33  ;;  %v191_v34 = vpop.permute.xlu0 %190 }
 0x296   :  { %v193_v35 = vsel %vm182_vm5, %v191_v34, 0.0 }
 0x297   :  { %194 = vadd.xlane.f32.xlu0 %v193_v35 }
 0x2a6   :  { %217 = vrot.lane.b32.xlu1 %v215_v37, %s667_s11 }
 0x2ad   :  { %208 = vrot.lane.b32.xlu0 %v206_v39, %s667_s11 }
 0x322   :  { %v185_v46 = vpop.xlane.xlu1 %184 }
 0x323   :  { %v187_v47 = vmul.f32 0.03125, %v185_v46 }
 0x324   :  { %v195_v48 = vpop.xlane.xlu0 %194 }
 0x325   :  { %v197_v49 = vmul.f32 %v187_v47, %v187_v47  ;;  %v196_v50 = vmul.f32 0.03125, %v195_v48  ;;  %v199_v53 = vsub.f32 %v177_v30, %v187_v47  ;;  %v384_v30 = vld [vmem:[%s832_s6 + $0x10] sm:$0xff] }
 0x326   :  { %v218_v57 = vpop.permute.xlu1 %217  ;;  %v553_v32 = vpack.c.bf16 %v385_v17, %v384_v30 }
 0x327   :  { %v198_v51 = vsub.f32 %v196_v50, %v197_v49 }
 0x328   :  { %v209_v55 = vpop.permute.xlu0 %208  ;;  %554 = vmatpush3.bf16.msra.mxu0 %v553_v32 }
 0x329   :  { %v200_v52 = vadd.f32 1e-05, %v198_v51 }
 0x32b   :  { %575 = vrsqrt.f32 %v200_v52 }
 0x335   :  { %v576_v54 = vpop.eup %575 }
 0x336   :  { %v202_v56 = vmul.f32 %v576_v54, %v199_v53 }
 0x338   :  { %v211_v58 = vmul.f32 %v209_v55, %v202_v56 }
 0x33a   :  { %v220_v59 = vadd.f32 %v218_v57, %v211_v58 }
 0x33c   :  { %235 = vrot.lane.b32.xlu1 %v220_v59, %s669_s13 }
 0x3ae   :  { %v236_v60 = vpop.permute.xlu1 %235 }
 0x3af   :  { %526 = vmatmul.mubr.msk.f32.vlgmr.msra.gmra.mrb[0].mxu1 %vm237_vm6, %v236_v60 }
 0x482   :  { %v306_v62 = vpop.f32.mrb[0].mxu1 }
 0x483   :  { %v307_v63 = vadd.f32 %v491_v61, %v306_v62  ;;  %v527_v1 = vpop.f32.mrb[1].mxu1 }
 0x485   :  { %v493_v2 = vmul.f32 -1.442695, %v307_v63 }
 0x487   :  { %577 = vpow2.f32 %v493_v2 }
 0x491   :  { %v578_v3 = vpop.eup %577 }
 0x492   :  { %v313_v4 = vadd.f32 1.0, %v578_v3 }
 0x494   :  { %579 = vrcp.f32 %v313_v4 }
 0x49e   :  { %v580_v5 = vpop.eup %579 }
 0x49f   :  { %323 = vrot.lane.b32.xlu0 %v580_v5, %s667_s11  ;;  %v316_v6 = vmul.f32 2.0, %v580_v5 }
 0x4a1   :  { %v494_v7 = vadd.f32 -1.0, %v316_v6 }
 0x4a3   :  { %330 = vrot.lane.b32.xlu1 %v494_v7, %s668_s0 }
 0x511   :  { %v324_v10 = vpop.permute.xlu0 %323 }
 0x512   :  { %v326_v11 = vmul.f32 %v324_v10, %v321_v9 }
 0x514   :  { %v327_v12 = vmul.f32 1.442695, %v326_v11 }
 0x515   :  { %v331_v13 = vpop.permute.xlu1 %330 }
 0x516   :  { %581 = vpow2.f32 %v327_v12  ;;  %v333_v14 = vmul.f32 %v580_v5, %v331_v13 }
 0x520   :  { %v582_v15 = vpop.eup %581 }
 0x521   :  { %v334_v16 = vmul.f32 %v582_v15, %v333_v14 }
 0x523   :  { %583 = vtanh.f32 %v334_v16 }
 0x52d   :  { %v584_v19 = vpop.eup %583 }
 0x52e   :  { %337 = vrot.lane.b32.xlu0 %v584_v19, %s667_s11 }
 0x5a0   :  { %v338_v20 = vpop.permute.xlu0 %337 }
 0x5a1   :  { %v340_v21 = vmul.f32 %v580_v5, %v338_v20 }
 0x5a3   :  { %342 = vrot.lane.b32.xlu1 %v340_v21, %s669_s13  ;;  %v349_v22 = vmul.f32 %v340_v21, %v340_v21 }
 0x5a5   :  { %351 = vrot.lane.b32.xlu0 %v349_v22, %s669_s13 }
 0x615   :  { %v343_v18 = vpop.permute.xlu1 %342 }
 0x616   :  { %v345_v23 = vsel %vm182_vm5, %v343_v18, 0.0 }
 0x617   :  { %346 = vadd.xlane.f32.xlu1 %v345_v23  ;;  %v352_v24 = vpop.permute.xlu0 %351 }
 0x618   :  { %v354_v25 = vsel %vm182_vm5, %v352_v24, 0.0 }
 0x619   :  { %355 = vadd.xlane.f32.xlu0 %v354_v25 }
 0x628   :  { %378 = vrot.lane.b32.xlu1 %v376_v26, %s667_s11 }
 0x62f   :  { %369 = vrot.lane.b32.xlu0 %v367_v27, %s667_s11 }
 0x6a4   :  { %v347_v33 = vpop.xlane.xlu1 %346 }
 0x6a5   :  { %v348_v34 = vmul.f32 0.03125, %v347_v33 }
 0x6a6   :  { %v356_v35 = vpop.xlane.xlu0 %355 }
 0x6a7   :  { %v358_v36 = vmul.f32 %v348_v34, %v348_v34  ;;  %v357_v37 = vmul.f32 0.03125, %v356_v35  ;;  %v360_v40 = vsub.f32 %v340_v21, %v348_v34 }
 0x6a8   :  { %v379_v44 = vpop.permute.xlu1 %378 }
 0x6a9   :  { %v359_v38 = vsub.f32 %v357_v37, %v358_v36 }
 0x6aa   :  { %v370_v42 = vpop.permute.xlu0 %369 }
 0x6ab   :  { %v361_v39 = vadd.f32 1e-05, %v359_v38 }
 0x6ad   :  { %585 = vrsqrt.f32 %v361_v39 }
 0x6b7   :  { %v586_v41 = vpop.eup %585 }
 0x6b8   :  { %v363_v43 = vmul.f32 %v586_v41, %v360_v40 }
 0x6ba   :  { %v372_v45 = vmul.f32 %v370_v42, %v363_v43 }
 0x6bc   :  { %v381_v46 = vadd.f32 %v379_v44, %v372_v45 }
 0x6be   :  { %394 = vrot.lane.b32.xlu1 %v381_v46, %s669_s13 }
 0x730   :  { %v395_v47 = vpop.permute.xlu1 %394 }
 0x731   :  { %537 = vmatmul.mubr.msk.f32.vlgmr.msra.gmra.mrb[2].mxu0 %vm237_vm6, %v395_v47 }
 0x804   :  { %v464_v48 = vpop.f32.mrb[2].mxu0 }
 0x805   :  { %v465_v49 = vadd.f32 %v495_v0, %v464_v48  ;;  %v538_v50 = vpop.f32.mrb[3].mxu0 }
 0x807   :  { %468 = vst [vmem:[#allocation7] sm:$0x3] %v465_v49 }
 0x808   :  { %642 = shalt.err (!%p639_p6)
}
 0x809   :  { %s643_s28 = scalar_lea.hbm %s834_s8, 32 }
 0x80a   :  { %p644_p7 = scmp.ne.s32.totalorder %s834_s8, %s643_s28  ;;  %p647_p8 = scmp.lt.u32.totalorder %s643_s28, %s834_s8 }
 0x80c   :  { %p649_p9 = pnand %p647_p8, %p644_p7 }
 0x80e   :  { %652 = shalt.err (!%p649_p9)
}
 0x80f   :  { %478 = dma.vmem_to_hbm [thread:$0]  %s476_s26, 32, %s834_s8, [#allocation4]  }
 0x810   :  { %657 = dma.done.wait [#allocation4], 32  }
 0x811   :  { %658 = vsyncadd [#allocation4], 4294967264 }
 0x812   :  { %482 = vsyncpa [#allocation3], 1 }
 0x813   :  { %483 = vsyncpa [#allocation6], 1 }
 0x814   :  { %484 = vsyncpa [#allocation4], 1 }

</bundles_post_ra>
